<compile_context>
chip_gen: v7x
topology: tpu7x:2x2x1
jax: 0.10.0
libtpu: 0.0.40
codegen_flags: <defaults>
</compile_context>

<pallas_src>
import jax
import jax.numpy as jnp
from jax.experimental import pallas as pl
from jax.experimental.pallas import tpu as pltpu


# ----------------------------------------------------------------------------
# Kernels
# ----------------------------------------------------------------------------
def _sae_kernel_direct(x_ref, we_ref, be_ref, wd_ref, bd_ref, f_ref, out_ref):
    """f32-output variant: accumulate straight into out_ref (block resident
    across the m axis); b_dec is folded into the j==0 init."""
    j = pl.program_id(1)

    @pl.when(j == 0)
    def _():
        out_ref[...] = jnp.broadcast_to(
            bd_ref[...].astype(jnp.float32), out_ref.shape)

    # Encoder: relu(x @ W_enc_tile + b_enc_tile) -- MXU, f32 accumulation.
    pre = jnp.dot(x_ref[...], we_ref[...], preferred_element_type=jnp.float32)
    f = jnp.maximum(pre + be_ref[...].astype(jnp.float32), 0.0)
    f_ref[...] = f.astype(f_ref.dtype)

    # Decoder partial sum: out += f_tile @ W_dec_tile.
    out_ref[...] += jnp.dot(f.astype(wd_ref.dtype), wd_ref[...],
                            preferred_element_type=jnp.float32)


def _sae_kernel_acc(x_ref, we_ref, be_ref, wd_ref, bd_ref, f_ref, out_ref,
                    acc_ref):
    """Non-f32-output variant: f32 scratch accumulator, cast on the last step."""
    j = pl.program_id(1)

    @pl.when(j == 0)
    def _():
        acc_ref[...] = jnp.broadcast_to(
            bd_ref[...].astype(jnp.float32), acc_ref.shape)

    pre = jnp.dot(x_ref[...], we_ref[...], preferred_element_type=jnp.float32)
    f = jnp.maximum(pre + be_ref[...].astype(jnp.float32), 0.0)
    f_ref[...] = f.astype(f_ref.dtype)

    acc_ref[...] += jnp.dot(f.astype(wd_ref.dtype), wd_ref[...],
                            preferred_element_type=jnp.float32)

    @pl.when(j == pl.num_programs(1) - 1)
    def _():
        out_ref[...] = acc_ref[...].astype(out_ref.dtype)


# ----------------------------------------------------------------------------
# Tiling helpers
# ----------------------------------------------------------------------------
def _tpu_generation():
    try:
        kind = jax.devices()[0].device_kind.lower()
    except Exception:  # pragma: no cover - e.g. interpret mode on CPU
        return "unknown"
    if "v5e" in kind or "v5 lite" in kind or "v5lite" in kind:
        return "v5e"
    if "v6" in kind:
        return "v6e"
    if "v7" in kind:
        return "v7x"
    return "unknown"


def _pick_tile(dim, target, align):
    """Largest multiple of `align` that divides `dim` and is <= target.
    Falls back to the full dim (always a legal block); the wrapper checks the
    resulting VMEM footprint and errors out if it cannot fit."""
    if dim <= target:
        return dim
    t = (min(target, dim) // align) * align
    while t >= align:
        if dim % t == 0:
            return t
        t -= align
    return dim


def _vmem_footprint(tb, tm, n, x_bytes, w_bytes, b_bytes, f_bytes, out_bytes,
                    use_acc):
    """Double-buffered VMEM footprint of one grid step, in bytes."""
    buf = 2                                   # BlockSpec double-buffering
    fp = buf * tb * n * x_bytes               # x tile (resident across m)
    fp += buf * n * tm * w_bytes              # W_enc.T tile
    fp += buf * 8 * tm * b_bytes              # b_enc tile (1, tm) sublane-padded
    fp += buf * tm * n * w_bytes              # W_dec.T tile
    fp += buf * 8 * n * b_bytes               # b_dec (1, n) sublane-padded
    fp += buf * tb * tm * f_bytes             # f output tile
    fp += buf * tb * n * out_bytes            # out output tile
    if use_acc:
        fp += tb * n * 4                      # f32 accumulator scratch
    return fp


# ----------------------------------------------------------------------------
# Wrapper
# ----------------------------------------------------------------------------
def sae_forward(x, w_enc, b_enc, w_dec, b_dec, *, tb=None, tm=None,
                compute_dtype=None, f_dtype=None):
    """SAE forward pass.  Returns (f, out).

    compute_dtype: optional dtype (e.g. jnp.bfloat16) to cast x / weights to
      before the kernel (MXU full-rate path; f32 accumulation is kept).  Note
      this re-quantizes the latent f before the decoder matmul, so results
      differ from a pure-f32 reference within bf16 tolerance.
    f_dtype: optional storage dtype for f (defaults to x.dtype).
    """
    B, n = x.shape
    m, n2 = w_enc.shape
    assert n == n2 and w_dec.shape == (n, m)
    assert b_enc.shape == (m,) and b_dec.shape == (n,)

    out_dtype = x.dtype
    if f_dtype is None:
        f_dtype = x.dtype

    # Optional low-precision MXU path (cast once in the wrapper).
    if compute_dtype is not None:
        x = x.astype(compute_dtype)
        w_enc = w_enc.astype(compute_dtype)
        w_dec = w_dec.astype(compute_dtype)

    x_bytes = jnp.dtype(x.dtype).itemsize
    w_bytes = jnp.dtype(w_enc.dtype).itemsize
    b_bytes = jnp.dtype(b_enc.dtype).itemsize
    f_bytes = jnp.dtype(f_dtype).itemsize
    out_bytes = jnp.dtype(out_dtype).itemsize
    sublane = {4: 8, 2: 16, 1: 32}.get(x_bytes, 8)

    # Generation-aware tile targets and VMEM budgets.
    gen = _tpu_generation()
    phys_vmem = (64 << 20) if gen == "v7x" else (128 << 20)
    budget = int(phys_vmem * 0.85)
    if gen == "v6e":
        tb_target, tm_target = 512, 512
    elif gen == "v7x":
        tb_target = 512
        tm_target = 512 if w_bytes <= 2 else 256   # f32 weights -> tighter tm
    elif gen == "v5e":
        tb_target, tm_target = 256, 256
    else:
        tb_target, tm_target = 256, 256

    use_acc = out_dtype != jnp.float32

    tb_user, tm_user = tb, tm
    if tb is None:
        tb = _pick_tile(B, tb_target, sublane)
    if tm is None:
        tm = _pick_tile(m, tm_target, 128)

    def fp(tb_, tm_):
        return _vmem_footprint(tb_, tm_, n, x_bytes, w_bytes, b_bytes,
                               f_bytes, out_bytes, use_acc)

    # Shrink auto-picked tiles until the double-buffered footprint fits VMEM.
    while fp(tb, tm) > budget:
        prev = (tb, tm)
        if tm_user is None and tm > 128:
            tm_target = max(128, tm_target // 2)
            tm = _pick_tile(m, tm_target, 128)
        elif tb_user is None and tb > sublane:
            tb_target = max(sublane, tb_target // 2)
            tb = _pick_tile(B, tb_target, sublane)
        if (tb, tm) == prev:
            break
    if fp(tb, tm) > phys_vmem:
        raise ValueError(
            f"SAE tiles (tb={tb}, tm={tm}, n={n}) need "
            f"{fp(tb, tm) / 2**20:.1f} MiB VMEM, exceeding the "
            f"{phys_vmem >> 20} MiB physical budget ({gen}); pass smaller "
            f"tb/tm or pad B/m to tileable sizes.")

    # v7x megacore: keep >= 2 batch blocks so both TensorCores get work.
    if gen == "v7x" and tb_user is None and B // tb < 2 and B >= 2 * sublane:
        half = _pick_tile(B, B // 2, sublane)
        if half < B and B % half == 0:
            tb = half

    assert B % tb == 0, f"tb={tb} must divide B={B}"
    assert m % tm == 0, f"tm={tm} must divide m={m}"

    # Pre-transpose once outside the kernel (single XLA transpose, amortized).
    w_enc_t = w_enc.T                  # (n, m)
    w_dec_t = w_dec.T                  # (m, n)
    b_enc2 = b_enc.reshape(1, m)
    b_dec2 = b_dec.reshape(1, n)

    grid = (B // tb, m // tm)
    num_batch_tiles = B // tb

    flops = 2 * B * n * m * 2          # encoder + decoder matmuls
    bytes_accessed = int(
        B * n * x_bytes                                        # x read once
        + num_batch_tiles * (w_enc_t.size * w_bytes            # weights re-read
                             + w_dec_t.size * w_bytes          #   per batch tile
                             + (m + n) * b_bytes)
        + B * m * f_bytes                                      # f written
        + B * n * out_bytes)                                   # out written

    vmem_limit = int(min(phys_vmem,
                         max(fp(tb, tm) * 5 // 4 + (4 << 20), 32 << 20)))

    kernel = _sae_kernel_acc if use_acc else _sae_kernel_direct
    scratch = ([pltpu.VMEM((tb, n), jnp.float32)] if use_acc else [])

    f, out = pl.pallas_call(
        kernel,
        out_shape=(
            jax.ShapeDtypeStruct((B, m), f_dtype),
            jax.ShapeDtypeStruct((B, n), out_dtype),
        ),
        grid_spec=pltpu.PrefetchScalarGridSpec(
            num_scalar_prefetch=0,
            grid=grid,
            in_specs=[
                pl.BlockSpec((tb, n), lambda i, j: (i, 0)),    # x tile
                pl.BlockSpec((n, tm), lambda i, j: (0, j)),    # W_enc.T tile
                pl.BlockSpec((1, tm), lambda i, j: (0, j)),    # b_enc tile
                pl.BlockSpec((tm, n), lambda i, j: (j, 0)),    # W_dec.T tile
                pl.BlockSpec((1, n), lambda i, j: (0, 0)),     # b_dec
            ],
            out_specs=[
                pl.BlockSpec((tb, tm), lambda i, j: (i, j)),   # f
                pl.BlockSpec((tb, n), lambda i, j: (i, 0)),    # out (acc over j)
            ],
            scratch_shapes=scratch,
        ),
        compiler_params=pltpu.CompilerParams(
            dimension_semantics=("parallel", "arbitrary"),
            vmem_limit_bytes=vmem_limit,
        ),
        cost_estimate=pl.CostEstimate(
            flops=flops, transcendentals=0, bytes_accessed=bytes_accessed),
    )(x, w_enc_t, b_enc2, w_dec_t, b_dec2)
    return f, out


# ----------------------------------------------------------------------------
# Demo / correctness check
# ----------------------------------------------------------------------------
if __name__ == "__main__":
    # Small, lane-aligned shapes: batch=16, n=128 (input), m=256 (latent).
    B, n, m = 16, 128, 256
    key = jax.random.PRNGKey(0)
    kx, ke, kd = jax.random.split(key, 3)

    x = jax.random.normal(kx, (B, n), dtype=jnp.float32)
    w_enc = jax.random.uniform(ke, (m, n), minval=-1.0 / jnp.sqrt(n),
                               maxval=1.0 / jnp.sqrt(n), dtype=jnp.float32)
    w_dec = jax.random.uniform(kd, (n, m), minval=-1.0 / jnp.sqrt(m),
                               maxval=1.0 / jnp.sqrt(m), dtype=jnp.float32)
    b_enc = jnp.zeros((m,), dtype=jnp.float32)   # nn.init.zeros_
    b_dec = jnp.zeros((n,), dtype=jnp.float32)   # nn.init.zeros_

    # Pure-JAX reference.
    f_ref = jnp.maximum(x @ w_enc.T + b_enc, 0.0)
    out_ref = f_ref @ w_dec.T + b_dec

    # 1) Explicit small tiles: exercises both the batch and the m grid axes.
    f1, out1 = sae_forward(x, w_enc, b_enc, w_dec, b_dec, tb=8, tm=128)
    jax.block_until_ready((f1, out1))
    assert jnp.allclose(f1, f_ref, atol=1e-5, rtol=1e-5)
    assert jnp.allclose(out1, out_ref, atol=1e-5, rtol=1e-5)

    # 2) Auto (generation-aware) tile selection path.
    f2, out2 = sae_forward(x, w_enc, b_enc, w_dec, b_dec)
    jax.block_until_ready((f2, out2))
    assert jnp.allclose(f2, f_ref, atol=1e-5, rtol=1e-5)
    assert jnp.allclose(out2, out_ref, atol=1e-5, rtol=1e-5)

    print("KERNEL_OK")
</pallas_src>

<mosaic_0001>
module attributes {stable_mosaic.version = 11 : i64} {
  func.func @_sae_kernel_direct(%arg0: i32, %arg1: i32, %arg2: memref<8x128xf32, #tpu.memory_space<vmem>>, %arg3: memref<128x128xf32, #tpu.memory_space<vmem>>, %arg4: memref<1x128xf32, #tpu.memory_space<vmem>>, %arg5: memref<128x128xf32, #tpu.memory_space<vmem>>, %arg6: memref<1x128xf32, #tpu.memory_space<vmem>>, %arg7: memref<8x128xf32, #tpu.memory_space<vmem>>, %arg8: memref<8x128xf32, #tpu.memory_space<vmem>>) attributes {dimension_semantics = [#tpu.dimension_semantics<parallel>, #tpu.dimension_semantics<arbitrary>], iteration_bounds = array<i64: 2, 2>, scalar_prefetch = 0 : i64, scratch_operands = 0 : i64, tpu.core_type = #tpu.core_type<tc>, window_params = [{transform_indices = @transform_0, window_bounds = array<i64: 8, 128>}, {transform_indices = @transform_1, window_bounds = array<i64: 128, 128>}, {transform_indices = @transform_2, window_bounds = array<i64: 1, 128>}, {transform_indices = @transform_3, window_bounds = array<i64: 128, 128>}, {pipeline_mode = #tpu.pipeline_mode<synchronous>, transform_indices = @transform_4, window_bounds = array<i64: 1, 128>}, {transform_indices = @transform_5, window_bounds = array<i64: 8, 128>}, {transform_indices = @transform_6, window_bounds = array<i64: 8, 128>}]} {
    %c0_i32 = arith.constant 0 : i32
    %0 = arith.cmpi eq, %arg1, %c0_i32 : i32
    %1 = arith.extui %0 : i1 to i32
    %c0_i32_0 = arith.constant 0 : i32
    %2 = arith.cmpi ne, %1, %c0_i32_0 : i32
    scf.if %2 {
      %c0_16 = arith.constant 0 : index
      %c0_17 = arith.constant 0 : index
      %17 = vector.load %arg6[%c0_16, %c0_17] : memref<1x128xf32, #tpu.memory_space<vmem>>, vector<1x128xf32>
      %18 = vector.shape_cast %17 : vector<1x128xf32> to vector<1x128xf32>
      %19 = vector.broadcast %18 : vector<1x128xf32> to vector<8x128xf32>
      %c0_18 = arith.constant 0 : index
      %c0_19 = arith.constant 0 : index
      %20 = vector.load %arg8[%c0_18, %c0_19] : memref<8x128xf32, #tpu.memory_space<vmem>>, vector<8x128xf32>
      tpu.vector_store %arg8[%c0_18, %c0_19], %19 {strides = array<i32>} : memref<8x128xf32, #tpu.memory_space<vmem>>, vector<8x128xf32>,
    } else {
    }
    %c0 = arith.constant 0 : index
    %c0_1 = arith.constant 0 : index
    %3 = vector.load %arg2[%c0, %c0_1] : memref<8x128xf32, #tpu.memory_space<vmem>>, vector<8x128xf32>
    %c0_2 = arith.constant 0 : index
    %c0_3 = arith.constant 0 : index
    %4 = vector.load %arg3[%c0_2, %c0_3] : memref<128x128xf32, #tpu.memory_space<vmem>>, vector<128x128xf32>
    %cst = arith.constant dense<0.000000e+00> : vector<8x128xf32>
    %5 = tpu.matmul %3, %4, %cst {dimension_numbers = #tpu.dot_dimension_numbers<[1], [0], [0], [1], [0, 0, 1, 1], [], []>} : vector<8x128xf32>, vector<128x128xf32>, vector<8x128xf32> -> vector<8x128xf32>
    %c0_4 = arith.constant 0 : index
    %c0_5 = arith.constant 0 : index
    %6 = vector.load %arg4[%c0_4, %c0_5] : memref<1x128xf32, #tpu.memory_space<vmem>>, vector<1x128xf32>
    %7 = vector.broadcast %6 : vector<1x128xf32> to vector<8x128xf32>
    %8 = arith.addf %5, %7 : vector<8x128xf32>
    %cst_6 = arith.constant 0.000000e+00 : f32
    %9 = vector.broadcast %cst_6 : f32 to vector<8x128xf32>
    %10 = arith.maximumf %8, %9 : vector<8x128xf32>
    %c0_7 = arith.constant 0 : index
    %c0_8 = arith.constant 0 : index
    %11 = vector.load %arg7[%c0_7, %c0_8] : memref<8x128xf32, #tpu.memory_space<vmem>>, vector<8x128xf32>
    tpu.vector_store %arg7[%c0_7, %c0_8], %10 {strides = array<i32>} : memref<8x128xf32, #tpu.memory_space<vmem>>, vector<8x128xf32>,
    %c0_9 = arith.constant 0 : index
    %c0_10 = arith.constant 0 : index
    %12 = vector.load %arg8[%c0_9, %c0_10] : memref<8x128xf32, #tpu.memory_space<vmem>>, vector<8x128xf32>
    %c0_11 = arith.constant 0 : index
    %c0_12 = arith.constant 0 : index
    %13 = vector.load %arg5[%c0_11, %c0_12] : memref<128x128xf32, #tpu.memory_space<vmem>>, vector<128x128xf32>
    %cst_13 = arith.constant dense<0.000000e+00> : vector<8x128xf32>
    %14 = tpu.matmul %10, %13, %cst_13 {dimension_numbers = #tpu.dot_dimension_numbers<[1], [0], [0], [1], [0, 0, 1, 1], [], []>} : vector<8x128xf32>, vector<128x128xf32>, vector<8x128xf32> -> vector<8x128xf32>
    %15 = arith.addf %12, %14 : vector<8x128xf32>
    %c0_14 = arith.constant 0 : index
    %c0_15 = arith.constant 0 : index
    %16 = vector.load %arg8[%c0_14, %c0_15] : memref<8x128xf32, #tpu.memory_space<vmem>>, vector<8x128xf32>
    tpu.vector_store %arg8[%c0_14, %c0_15], %15 {strides = array<i32>} : memref<8x128xf32, #tpu.memory_space<vmem>>, vector<8x128xf32>,
    return
  }
  func.func @transform_0(%arg0: i32, %arg1: i32) -> (i32, i32) {
    %c0_i32 = arith.constant 0 : i32
    %c0_i32_0 = arith.constant 0 : i32
    return %arg0, %c0_i32 : i32, i32
  }
  func.func @transform_1(%arg0: i32, %arg1: i32) -> (i32, i32) {
    %c0_i32 = arith.constant 0 : i32
    %c0_i32_0 = arith.constant 0 : i32
    return %c0_i32, %arg1 : i32, i32
  }
  func.func @transform_2(%arg0: i32, %arg1: i32) -> (i32, i32) {
    %c0_i32 = arith.constant 0 : i32
    %c0_i32_0 = arith.constant 0 : i32
    return %c0_i32, %arg1 : i32, i32
  }
  func.func @transform_3(%arg0: i32, %arg1: i32) -> (i32, i32) {
    %c0_i32 = arith.constant 0 : i32
    %c0_i32_0 = arith.constant 0 : i32
    return %arg1, %c0_i32 : i32, i32
  }
  func.func @transform_4(%arg0: i32, %arg1: i32) -> (i32, i32) {
    %c0_i32 = arith.constant 0 : i32
    %c0_i32_0 = arith.constant 0 : i32
    %c0_i32_1 = arith.constant 0 : i32
    return %c0_i32, %c0_i32_0 : i32, i32
  }
  func.func @transform_5(%arg0: i32, %arg1: i32) -> (i32, i32) {
    %c0_i32 = arith.constant 0 : i32
    return %arg0, %arg1 : i32, i32
  }
  func.func @transform_6(%arg0: i32, %arg1: i32) -> (i32, i32) {
    %c0_i32 = arith.constant 0 : i32
    %c0_i32_0 = arith.constant 0 : i32
    return %arg0, %c0_i32 : i32, i32
  }
}

</mosaic_0001>

<bundles_post_ra>
// kernel: tpu_custom_call.1
= control target key start
LH: loop header
LB: loop body
LE: loop exit
PB: predicated region body
PF: predicated region fallthrough
CT: control target
= control target key end

     0   :  { %s1940_s0 = inlined_call_operand.hbm [shape: f32[16,128], index: 0, kind: input, shape index: {}]   ;;  %s1941_s1 = inlined_call_operand.hbm [shape: f32[128,256], index: 1, kind: input, shape index: {}]   ;;  %s1942_s2 = inlined_call_operand.vmem [shape: f32[1,256], index: 2, kind: input, shape index: {}]   ;;  %s1943_s3 = inlined_call_operand.hbm [shape: f32[256,128], index: 3, kind: input, shape index: {}]   ;;  %s1944_s4 = inlined_call_operand.vmem [shape: f32[1,128], index: 4, kind: input, shape index: {}]   ;;  %s1945_s5 = inlined_call_operand.hbm [shape: f32[16,256], index: 5, kind: output, shape index: {0}]   ;;  %s1946_s6 = inlined_call_operand.hbm [shape: f32[16,128], index: 6, kind: output, shape index: {1}]  }
   0x1   :  { %1970 = sst [smem:[#allocation27_spill]] %s1940_s0 }
   0x2   :  { %1971 = sst [smem:[#allocation28_spill]] %s1941_s1 }
   0x3   :  { %1972 = sst [smem:[#allocation29_spill]] %s1942_s2 }
   0x4   :  { %1973 = sst [smem:[#allocation30_spill]] %s1944_s4 }
   0x5   :  { %1974 = sst [smem:[#allocation31_spill]] %s1945_s5 }
   0x6   :  { %1975 = sst [smem:[#allocation32_spill]] %s1946_s6 }
   0x7   :  { %12 = vsyncpa [#allocation3], 0 }
   0x8   :  { %14 = vsyncpa [#allocation3 + $0x1], 0 }
   0x9   :  { %15 = vsyncpa [#allocation6], 0 }
   0xa   :  { %17 = vsyncpa [#allocation6 + $0x1], 0 }
   0xb   :  { %18 = vsyncpa [#allocation4], 0 }
   0xc   :  { %20 = vsyncpa [#allocation4 + $0x1], 0 }
   0xd   :  { %21 = vsyncpa [#allocation10], 0 }
   0xe   :  { %23 = vsyncpa [#allocation10 + $0x1], 0  ;;  %s1428_s21 = smov 0   ;;  %s1430_s22 = smov 0  }
   0xf   :  { %s1432_s23 = smov 0   ;;  %s1434_s24 = smov 0  }
  0x10   :  { %s1436_s25 = smov 0   ;;  %s1438_s26 = smov 0  }
  0x11   :  { %s1440_s27 = smov 0   ;;  %s1442_s28 = smov 0  }
  0x12   :  { %s1444_s29 = smov 0   ;;  %s1446_s30 = smov 0  }
  0x13   :  { %s1448_s7 = smov 0   ;;  %s1450_s8 = smov 0  }
  0x14   :  { %s1452_s9 = smov 0   ;;  %s1454_s10 = smov 0  }
  0x15 LB: > { %1976 = sst [smem:[#allocation15_spill]] %s1336_s23  ;;  %p1950_p0 = scmp.eq.s32.totalorder %s1380_s10, 0  ;;  %s1380_s10 = sphi %s1454_s10, %s29_s10   ;;  %s1376_s9 = sphi %s1452_s9, %s2037_s9   ;;  %s1372_s8 = sphi %s1450_s8, %s2043_s8   ;;  %s1368_s7 = sphi %s1448_s7, %s2035_s7   ;;  %s1364_s30 = sphi %s1446_s30, %s2042_s30   ;;  %s1360_s29 = sphi %s1444_s29, %s2034_s29   ;;  %s1356_s28 = sphi %s1442_s28, %s2041_s28   ;;  %s1352_s27 = sphi %s1440_s27, %s2040_s27   ;;  %s1348_s26 = sphi %s1438_s26, %s2032_s26   ;;  %s1344_s25 = sphi %s1436_s25, %s2031_s25   ;;  %s1340_s24 = sphi %s1434_s24, %s2030_s24   ;;  %s1336_s23 = sphi %s1432_s23, %s2029_s23   ;;  %s1332_s22 = sphi %s1430_s22, %s2039_s22   ;;  %s1328_s21 = sphi %s1428_s21, %s2038_s21  }
  0x16   : > { %1977 = sst [smem:[#allocation16_spill]] %s1344_s25  ;;  %p81_p1 = scmp.ne.s32.totalorder %s1348_s26, %s1344_s25 }
  0x17   : > { %1978 = sst [smem:[#allocation17_spill]] %s1348_s26  ;;  %p1949_p2 = scmp.lt.s32.totalorder %s1380_s10, 4 }
  0x18   : > { %1979 = sst [smem:[#allocation18_spill]] %s1360_s29  ;;  %p83_p3 = por %p81_p1, %p1950_p0 }
  0x19   : > { %1980 = sst [smem:[#allocation19_spill]] %s1364_s30  ;;  %s259_s11 = sand.u32 1, %s1380_s10  }
  0x1a   : > { %1981 = sst [smem:[#allocation20_spill]] %s1368_s7  ;;  %s261_s12 = sand.u32 1, %s1348_s26  }
  0x1b   : > { %1982 = sst [smem:[#allocation21_spill]] %s1376_s9  ;;  %s1506_s13 = sshll.u32 %s261_s12, 7 }
  0x1c   : > { %s788_s14 = sshll.u32 %s1372_s8, 7  ;;  %s1983_s1 = sld [smem:[#allocation28_spill]] }
  0x1d   : > { %s263_s18 = scalar_lea.vmem [#allocation5], %s1506_s13  ;;  %p1517_p4 = pnand %p1949_p2, %p83_p3 }
  0x1e   : > { %s269_s19 = sshll.u32 %s263_s18, 4  ;;  %p792_p5 = scmp.ge.s32.totalorder %s1380_s10, 1  ;;  %s1521_s19 = int_to_ptr.vmem [resolvable:$true] %s269_s19 }
  0x1f   : > { %s1524_s12 = scalar_lea.sflag [#allocation6], %s259_s11  ;;  %p1956_p7 = pneg %p1517_p4 }
  0x22   : > { %s1512_s17 = scalar_lea.hbm %s1983_s1, %s788_s14  ;;  %s1113_s18 = scalar_lea.hbm %s1983_s1, 4096 }
  0x23   : > { %s1108_s14 = scalar_lea.hbm %s1512_s17, 2048  ;;  %p1114_p10 = scmp.lt.u32.totalorder %s1512_s17, %s1983_s1 }
  0x24   : > { %p1109_p6 = scmp.ne.s32.totalorder %s1512_s17, %s1108_s14  ;;  %p1115_p11 = scmp.lt.u32.totalorder %s1113_s18, %s1108_s14 }
  0x25   : > { %p1117_p13 = scmp.lt.u32.totalorder %s1108_s14, %s1512_s17 }
  0x26   : > { %p1111_p8 = pnand %p1956_p7, %p1109_p6  ;;  %p1116_p12 = por %p1115_p11, %p1114_p10 }
  0x28   : > { %p1112_p9 = pneg %p1111_p8  ;;  %p1118_p1 = por %p1117_p13, %p1116_p12 }
  0x2a   : > { %p1119_p3 = pnand %p1118_p1, %p1112_p9 }
  0x2c   : > { %1122 = shalt.err (!%p1119_p3)
}
  0x2d   : > { %s1123_s11 = scalar_lea.vmem %s1521_s19, 2048  ;;  %s1382_s15 = smov [#allocation5]  }
  0x2e   : > { %p1124_p6 = scmp.ne.s32.totalorder %s1521_s19, %s1123_s11  ;;  %s1128_s16 = sshll.u32 %s1382_s15, 4  ;;  %s1129_s16 = int_to_ptr.vmem [resolvable:$false] %s1128_s16 }
  0x2f   : > { %s1130_s5 = scalar_lea.vmem %s1129_s16, 4096  ;;  %p1131_p0 = scmp.lt.s32.totalorder %s1521_s19, %s1129_s16 }
  0x30   : > { %p1126_p8 = pnand %p1124_p6, %p1956_p7  ;;  %p1132_p10 = scmp.lt.s32.totalorder %s1130_s5, %s1123_s11 }
  0x32   : > { %p1127_p2 = pneg %p1126_p8  ;;  %p1133_p11 = por %p1132_p10, %p1131_p0 }
  0x34   : > { %p1134_p12 = pnand %p1133_p11, %p1127_p2 }
  0x36   : > { %1137 = shalt.err (!%p1134_p12)
}
  0x37   : > { %s1383_s6 = smov 256   ;;  %s1951_s14 = smov 128  }
  0x38   : > { %s1952_s18 = smov 8   ;;  %p304_p0 = scmp.lt.s32.totalorder %s1380_s10, 5 }
  0x39   : > { %977 = dma.hbm_to_vmem [thread:$0]  (!%p1517_p4), %s1512_s17, 2048, %s1521_s19, %s1524_s12, %s1383_s6, %s1951_s14, %s1952_s18  }
  0x3a   : > { %p1557_p2 = pnand %p792_p5, %p304_p0  ;;  %s1562_s15 = sadd.s32 4294967295, %s1380_s10  }
  0x3b   : > { %s38_s5 = sadd.s32 1, %s1372_s8  ;;  %s41_s1 = sadd.s32 1, %s1376_s9 }
  0x3c   : > { %s1985_s11 = scalar_select %p1557_p2, 1, 0 }
  0x3d   : > { %p39_p9 = scmp.ge.s32.totalorder %s38_s5, 2  ;;  %s48_s17 = sadd.s32 1, %s1360_s29 }
  0x3e   : > { %p1958_p13 = scmp.ne.s32.totalorder %s1360_s29, %s1356_s28  ;;  %p1957_p1 = scmp.ne.s32.totalorder %s1356_s28, %s1352_s27 }
  0x3f   : > { %s2045_s5 = smov (%p39_p9, %s38_s5), 0  ;;  %s2047_s1 = smov (!%p39_p9, %s41_s1), %s1376_s9 }
  0x40   : > { %1986 = sst [smem:[#allocation22_spill]] %s2045_s5  ;;  %p1987_p5 = scmp.eq.s32.totalorder %s1380_s10, 0 }
  0x41   : > { %p62_p6 = scmp.eq.s32.totalorder %s1562_s15, 0  ;;  %p43_p8 = scmp.ge.s32.totalorder %s2047_s1, 2 }
  0x42   : > { %p1580_p3 = por %p1987_p5, %p1958_p13  ;;  %s71_s6 = ssub.s32 %s1372_s8, %s2045_s5 }
  0x43   : > { %p1590_p10 = por %p62_p6, %p1957_p1  ;;  %p72_p11 = scmp.eq.s32.totalorder %s71_s6, 0 }
  0x44   : > { %s2049_s1 = smov (%p43_p8, %s2047_s1), 0  ;;  %s74_s18 = sadd.s32 1, %s1348_s26 }
  0x45   : > { %s1989_s14 = scalar_select %p1590_p10, 1, 0 }
  0x46   : > { %1990 = sst [smem:[#allocation23_spill]] %s2049_s1  ;;  %p87_p12 = scmp.ne.s32.totalorder %s1344_s25, %s1340_s24 }
  0x47   : > { %s45_s16 = ssub.s32 %s1376_s9, %s2049_s1  ;;  %s175_s5 = sadd.s32 1, %s1336_s23 }
  0x48   : > { %p46_p0 = scmp.eq.s32.totalorder %s45_s16, 0  ;;  %p1602_p9 = por %p87_p12, %p62_p6 }
  0x49   : > { %s1607_s4 = scalar_select %p72_p11, %s1348_s26, %s74_s18  }
  0x4a   : > { %s1991_s7 = scalar_select %p1602_p9, 1, 0 }
  0x4b   : > { %1992 = sst [smem:[#allocation24_spill]] %s1607_s4  ;;  %s172_s30 = sor.u32 %s71_s6, %s45_s16 }
  0x4c   : > { %s1610_s2 = scalar_select %p46_p0, %s1360_s29, %s48_s17  }
  0x4d   : > { %p185_p5 = scmp.ne.s32.totalorder %s1336_s23, %s1332_s22  ;;  %p173_p8 = scmp.eq.s32.totalorder %s172_s30, 0 }
  0x4e   : > { %1993 = sst [smem:[#allocation25_spill]] %s1610_s2  ;;  %p186_p7 = scmp.eq.s32.totalorder %s1562_s15, 3 }
  0x4f   : > { %p191_p1 = scmp.ne.s32.totalorder %s1332_s22, %s1328_s21  ;;  %s1994_s24 = sadd.s32 4294967294, %s1380_s10  }
  0x50   : > { %p192_p13 = scmp.eq.s32.totalorder %s1994_s24, 3  ;;  %p1622_p6 = por %p186_p7, %p185_p5 }
  0x51   : > { %s1620_s1 = scalar_select %p173_p8, %s1336_s23, %s175_s5  }
  0x52   : > { %s1996_s25 = scalar_select %p1622_p6, 1, 0 }
  0x53   : > { %1995 = sst [smem:[#allocation26_spill]] %s1620_s1  ;;  %p1626_p11 = por %p192_p13, %p191_p1 }
  0x54   : > { %p1998_p12 = scmp.ne.s32.totalorder %s1360_s29, %s1356_s28  ;;  %p2000_p9 = scmp.ne.s32.totalorder %s1356_s28, %s1352_s27 }
  0x55   : > { %s1997_s18 = scalar_select %p1626_p11, 1, 0 }
  0x56   : > { %p1633_p0 = por %p186_p7, %p1998_p12  ;;  %p1640_p10 = por %p192_p13, %p2000_p9 }
  0x57   : > { %s241_s5 = sand.u32 1, %s1360_s29   ;;  %s786_s17 = sshll.u32 %s1376_s9, 7 }
  0x58   : > { %s1999_s16 = scalar_select %p1633_p0, 1, 0 }
  0x59   : > { %s2001_s30 = scalar_select %p1640_p10, 1, 0 }
  0x5a   : > { %s785_s6 = sshll.u32 %s241_s5, 3  ;;  %s2002_s0 = sld [smem:[#allocation27_spill]] }
  0x5b   : > { %s245_s26 = scalar_lea.vmem [#allocation2], %s785_s6  ;;  %p2003_p7 = scmp.lt.s32.totalorder %s1380_s10, 4 }
  0x5c   : > { %s252_s1 = sshll.u32 %s245_s26, 4  ;;  %s808_s9 = sshll.u32 %s1372_s8, 11  ;;  %s1659_s1 = int_to_ptr.vmem [resolvable:$true] %s252_s1 }
  0x5d   : > { %p1655_p13 = pnand %p2003_p7, %p1580_p3  ;;  %s242_s2 = scalar_lea.sflag [#allocation3], %s241_s5 }
  0x5f   : > { %p1140_p9 = pneg %p1655_p13 }
  0x60   : > { %s1649_s4 = scalar_lea.hbm %s2002_s0, %s786_s17  ;;  %s1143_s6 = scalar_lea.hbm %s2002_s0, 256 }
  0x61   : > { %s1138_s17 = scalar_lea.hbm %s1649_s4, 128  ;;  %p1144_p3 = scmp.lt.u32.totalorder %s1649_s4, %s2002_s0 }
  0x62   : > { %p1139_p1 = scmp.ne.s32.totalorder %s1649_s4, %s1138_s17  ;;  %p1145_p12 = scmp.lt.u32.totalorder %s1143_s6, %s1138_s17 }
  0x63   : > { %p1147_p10 = scmp.lt.u32.totalorder %s1138_s17, %s1649_s4 }
  0x64   : > { %p1141_p5 = pnand %p1140_p9, %p1139_p1  ;;  %p1146_p7 = por %p1145_p12, %p1144_p3 }
  0x66   : > { %p1142_p8 = pneg %p1141_p5  ;;  %p1148_p11 = por %p1147_p10, %p1146_p7 }
  0x68   : > { %p1149_p0 = pnand %p1148_p11, %p1142_p8 }
  0x6a   : > { %1152 = shalt.err (!%p1149_p0)
}
  0x6b   : > { %s1153_s5 = scalar_lea.vmem %s1659_s1, 128  ;;  %s1386_s26 = smov [#allocation2]  }
  0x6c   : > { %p1154_p1 = scmp.ne.s32.totalorder %s1659_s1, %s1153_s5  ;;  %s1158_s19 = sshll.u32 %s1386_s26, 4  ;;  %s1159_s19 = int_to_ptr.vmem [resolvable:$false] %s1158_s19 }
  0x6d   : > { %s1160_s29 = scalar_lea.vmem %s1159_s19, 256  ;;  %p1161_p2 = scmp.lt.s32.totalorder %s1659_s1, %s1159_s19 }
  0x6e   : > { %p1156_p5 = pnand %p1154_p1, %p1140_p9  ;;  %p1162_p3 = scmp.lt.s32.totalorder %s1160_s29, %s1153_s5 }
  0x70   : > { %p1157_p6 = pneg %p1156_p5  ;;  %p1163_p12 = por %p1162_p3, %p1161_p2 }
  0x72   : > { %p1164_p10 = pnand %p1163_p12, %p1157_p6 }
  0x74   : > { %1167 = shalt.err (!%p1164_p10)
}
  0x75   : > { %974 = dma.hbm_to_vmem [thread:$0]  (!%p1655_p13), %s1649_s4, 128, %s1659_s1, %s242_s2  }
  0x76   : > { %s1692_s24 = scalar_lea.hbm %s1943_s3, %s808_s9  ;;  %s289_s5 = scalar_lea.vmem [#allocation7], %s1506_s13 }
  0x77   : > { %s296_s26 = sshll.u32 %s289_s5, 4  ;;  %s1168_s23 = scalar_lea.hbm %s1692_s24, 2048  ;;  %s1695_s26 = int_to_ptr.vmem [resolvable:$true] %s296_s26 }
  0x78   : > { %p1169_p2 = scmp.ne.s32.totalorder %s1692_s24, %s1168_s23  ;;  %p2005_p6 = pneg %p1517_p4 }
  0x79   : > { %s1173_s2 = scalar_lea.hbm %s1943_s3, 4096  ;;  %p1174_p13 = scmp.lt.u32.totalorder %s1692_s24, %s1943_s3 }
  0x7a   : > { %p1171_p11 = pnand %p1169_p2, %p2005_p6  ;;  %p1175_p9 = scmp.lt.u32.totalorder %s1173_s2, %s1168_s23 }
  0x7b   : > { %p1177_p7 = scmp.lt.u32.totalorder %s1168_s23, %s1692_s24 }
  0x7c   : > { %p1172_p0 = pneg %p1171_p11  ;;  %p1176_p8 = por %p1175_p9, %p1174_p13 }
  0x7e   : > { %p1178_p1 = por %p1177_p7, %p1176_p8 }
  0x80   : > { %p1179_p5 = pnand %p1178_p1, %p1172_p0 }
  0x82   : > { %1182 = shalt.err (!%p1179_p5)
}
  0x83   : > { %s1183_s13 = scalar_lea.vmem %s1695_s26, 2048  ;;  %p2006_p12 = pmov %p2005_p6 }
  0x84   : > { %p1184_p3 = scmp.ne.s32.totalorder %s1695_s26, %s1183_s13  ;;  %s1387_s29 = smov [#allocation7]  }
  0x85   : > { %s1188_s17 = sshll.u32 %s1387_s29, 4  ;;  %s1189_s17 = int_to_ptr.vmem [resolvable:$false] %s1188_s17 }
  0x86   : > { %p1186_p10 = pnand %p1184_p3, %p2006_p12  ;;  %s1190_s6 = scalar_lea.vmem %s1189_s17, 4096 }
  0x87   : > { %p1191_p6 = scmp.lt.s32.totalorder %s1695_s26, %s1189_s17  ;;  %p1192_p11 = scmp.lt.s32.totalorder %s1190_s6, %s1183_s13 }
  0x88   : > { %p1187_p2 = pneg %p1186_p10 }
  0x89   : > { %p1193_p13 = por %p1192_p11, %p1191_p6 }
  0x8b   : > { %p1194_p9 = pnand %p1193_p13, %p1187_p2 }
  0x8d   : > { %1197 = shalt.err (!%p1194_p9)
}
  0x8e   : > { %s2007_s5 = smov 8   ;;  %s2008_s23 = smov 128  }
  0x8f   : > { %980 = dma.hbm_to_vmem [thread:$0]  (!%p1517_p4), %s1692_s24, 2048, %s1695_s26, %s1524_s12, %s2008_s23, %s2008_s23, %s2007_s5  }
  0x90   : > { %p2009_p0 = scmp.ne.s32.totalorder %s1985_s11, 0 }
  0x91   : > { %s1727_s1 = sand.u32 (!%p2009_p0), 1, %s1356_s28   ;;  %p2010_p8 = scmp.ne.s32.totalorder (!%p2009_p0), %s1989_s14, 0 }
  0x92   : > { %308 = sbr.rel (%p2009_p0) target bundleno = 658 (0x292), region = 40  ;;  %s793_s4 = sshll.u32 (!%p2009_p0), %s1727_s1, 3 }
  0x93   : > { %s311_s2 = scalar_lea.sflag (!%p2009_p0), [#allocation3], %s1727_s1  ;;  %s1731_s9 = scalar_lea.vmem (!%p2009_p0), [#allocation2], %s793_s4 }
  0x99   : > { %1311 = dma.done.wait (%p2010_p8), %s311_s2, 128  }
  0x9a   : > { %1313 = vsyncadd (%p2010_p8), %s311_s2, 4294967168  ;;  %s2011_s20 = sld [smem:[#allocation16_spill]]  ;;  %s319_s12 = sand.u32 1, %s1562_s15  }
  0x9b   : > { %s320_s26 = scalar_lea.sflag [#allocation6], %s319_s12  ;;  %p2012_p4 = scmp.ne.s32.totalorder %s1991_s7, 0 }
  0xa0   : > { %s321_s11 = sand.u32 1, %s2011_s20  }
  0xa1   : > { %s794_s24 = sshll.u32 %s321_s11, 7 }
  0xa2   : > { %s1739_s19 = scalar_lea.vmem [#allocation5], %s794_s24 }
  0xa3   : > { %1315 = dma.done.wait (%p2012_p4), %s320_s26, 4096  }
  0xa4   : > { %1317 = vsyncadd (%p2012_p4), %s320_s26, 4294963200  ;;  %s2013_s13 = sld [smem:[#allocation19_spill]]  ;;  %s1969_s14 = sand.u32 1, %s1332_s22  }
  0xa5   : > { %s1748_s29 = sshll.u32 %s1969_s14, 3  ;;  %s2014_s5 = sld [smem:[#allocation29_spill]] }
  0xa6   : > { %s1758_s2 = scalar_lea.vmem [#allocation7], %s794_s24  ;;  %s371_s7 = scalar_lea.vmem [#allocation8], %s1748_s29 }
  0xa7   : > { %s1761_s20 = scalar_lea.vmem [#allocation9], %s793_s4 }
  0xaa   : > { %p379_p7 = scmp.lt.s32.totalorder %s2013_s13, 1  ;;  %p798_p1 = scmp.ne.s32.totalorder %s2013_s13, 0 }
  0xab   : > { %s2015_s26 = sld [smem:[#allocation30_spill]] (!%p798_p1) }
  0xac   : > { %s1752_s15 = scalar_select %p379_p7, %s2013_s13, 1 }
  0xad   : > { %386 = sbr.rel (%p798_p1) target bundleno = 180 (0xb4), region = 56 }
  0xae   : > { %s381_s23 = scalar_lea.vmem %s2014_s5, %s1752_s15 }
  0xb1   : > { %v799_v0 = vld [vmem:[%s2015_s26] ss:$0 sm:$0xff] (!%p798_p1) }
  0xb2   : > { %394 = vst [vmem:[%s1761_s20] sm:$0xff] (!%p798_p1), %v799_v0 }
  0xb4 PF: > { %v396_v1 = vld [vmem:[%s1739_s19] sm:$0xff]  ;;  %v397_v2 = vld [vmem:[%s1739_s19 + $0x8] sm:$0xff]  ;;  %v398_v3 = vld [vmem:[%s1739_s19 + $0x10] sm:$0xff]  ;;  %v1388_v4 = vmov 0.0|0.0   ;;  %vm1389_vm0 = vmmov 0   ;;  %v1390_v7 = vmov 0.0  }
  0xb5   : > { %913 = vmatprep.subr.bf16.mxu0 %v1388_v4  ;;  %v914_v5 = vpack.c.bf16 %v397_v2, %v396_v1  ;;  %v399_v6 = vld [vmem:[%s1739_s19 + $0x18] sm:$0xff]  ;;  %875 = vmatprep.mubr.msk.f32.mxu0 %vm1389_vm0, %v1390_v7  ;;  %v400_v9 = vld [vmem:[%s1739_s19 + $0x20] sm:$0xff]  ;;  %v401_v10 = vld [vmem:[%s1739_s19 + $0x28] sm:$0xff]  ;;  %s2016_s4 = sld [smem:[#allocation20_spill]]  ;;  %s2017_s24 = sld [smem:[#allocation19_spill]] }
  0xb6   : > { %937 = vmatprep.subr.bf16.mxu1 %v1388_v4  ;;  %910 = vmatprep.mubr.msk.f32.mxu1 %vm1389_vm0, %v1390_v7  ;;  %v917_v8 = vpack.c.bf16 %v399_v6, %v398_v3  ;;  %v492_v11 = vld [vmem:[%s1758_s2] sm:$0xff]  ;;  %v493_v12 = vld [vmem:[%s1758_s2 + $0x8] sm:$0xff]  ;;  %v494_v13 = vld [vmem:[%s1758_s2 + $0x10] sm:$0xff]  ;;  %v920_v15 = vpack.c.bf16 %v401_v10, %v400_v9  ;;  %s2019_s26 = sld [smem:[#allocation31_spill]]  ;;  %s2021_s15 = sand.u32 1, %s1332_s22  }
  0xb7   : > { %915 = vmatpush3.bf16.msra.mxu0 %v914_v5  ;;  %v495_v14 = vld [vmem:[%s1758_s2 + $0x18] sm:$0xff]  ;;  %v938_v16 = vpack.c.bf16 %v493_v12, %v492_v11  ;;  %v402_v17 = vld [vmem:[%s1739_s19 + $0x30] sm:$0xff]  ;;  %v496_v20 = vld [vmem:[%s1758_s2 + $0x20] sm:$0xff]  ;;  %p2022_p3 = scmp.ne.s32.totalorder %s1996_s25, 0  ;;  %s1391_s13 = smov [#allocation8]  }
  0xb8   : > { %916 = vmatprep.subr.bf16.mxu0 %v1388_v4  ;;  %v403_v18 = vld [vmem:[%s1739_s19 + $0x38] sm:$0xff]  ;;  %v941_v19 = vpack.c.bf16 %v495_v14, %v494_v13  ;;  %v497_v21 = vld [vmem:[%s1758_s2 + $0x28] sm:$0xff]  ;;  %v404_v23 = vld [vmem:[%s1739_s19 + $0x40] sm:$0xff]  ;;  %s1202_s17 = sshll.u32 %s1391_s13, 4  ;;  %s1203_s17 = int_to_ptr.vmem [resolvable:$false] %s1202_s17 }
  0xb9   : > { %939 = vmatpush3.bf16.msra.mxu1 %v938_v16  ;;  %v923_v22 = vpack.c.bf16 %v403_v18, %v402_v17  ;;  %v405_v24 = vld [vmem:[%s1739_s19 + $0x48] sm:$0xff]  ;;  %v944_v25 = vpack.c.bf16 %v497_v21, %v496_v20  ;;  %v498_v26 = vld [vmem:[%s1758_s2 + $0x30] sm:$0xff]  ;;  %v499_v27 = vld [vmem:[%s1758_s2 + $0x38] sm:$0xff] }
  0xba   : > { %940 = vmatprep.subr.bf16.mxu1 %v1388_v4  ;;  %v926_v28 = vpack.c.bf16 %v405_v24, %v404_v23  ;;  %v406_v29 = vld [vmem:[%s1739_s19 + $0x50] sm:$0xff]  ;;  %v407_v30 = vld [vmem:[%s1739_s19 + $0x58] sm:$0xff]  ;;  %v947_v31 = vpack.c.bf16 %v499_v27, %v498_v26  ;;  %v500_v32 = vld [vmem:[%s1758_s2 + $0x40] sm:$0xff] }
  0xbb   : > { %918 = vmatpush3.bf16.msra.mxu0 %v917_v8  ;;  %v501_v33 = vld [vmem:[%s1758_s2 + $0x48] sm:$0xff]  ;;  %v929_v34 = vpack.c.bf16 %v407_v30, %v406_v29  ;;  %v408_v35 = vld [vmem:[%s1739_s19 + $0x60] sm:$0xff]  ;;  %v502_v38 = vld [vmem:[%s1758_s2 + $0x50] sm:$0xff] }
  0xbc   : > { %919 = vmatprep.subr.bf16.mxu0 %v1388_v4  ;;  %v409_v36 = vld [vmem:[%s1739_s19 + $0x68] sm:$0xff]  ;;  %v950_v37 = vpack.c.bf16 %v501_v33, %v500_v32  ;;  %v503_v39 = vld [vmem:[%s1758_s2 + $0x58] sm:$0xff]  ;;  %v410_v41 = vld [vmem:[%s1739_s19 + $0x70] sm:$0xff]  ;;  %s2020_s14 = smov %s2019_s26 }
  0xbd   : > { %942 = vmatpush3.bf16.msra.mxu1 %v941_v19  ;;  %v932_v40 = vpack.c.bf16 %v409_v36, %v408_v35  ;;  %v411_v42 = vld [vmem:[%s1739_s19 + $0x78] sm:$0xff]  ;;  %v953_v43 = vpack.c.bf16 %v503_v39, %v502_v38  ;;  %v504_v44 = vld [vmem:[%s1758_s2 + $0x60] sm:$0xff]  ;;  %v505_v45 = vld [vmem:[%s1758_s2 + $0x68] sm:$0xff] }
  0xbe   : > { %943 = vmatprep.subr.bf16.mxu1 %v1388_v4  ;;  %v935_v46 = vpack.c.bf16 %v411_v42, %v410_v41  ;;  %v956_v47 = vpack.c.bf16 %v505_v45, %v504_v44  ;;  %v395_v48 = vld [vmem:[%s1731_s9] sm:$0xff]  ;;  %s803_s9 = sshll.u32 %s2016_s4, 1 }
  0xbf   : > { %921 = vmatpush3.bf16.msra.mxu0 %v920_v15  ;;  %v506_v49 = vld [vmem:[%s1758_s2 + $0x70] sm:$0xff]  ;;  %v507_v50 = vld [vmem:[%s1758_s2 + $0x78] sm:$0xff]  ;;  %s597_s6 = sadd.s32 %s2017_s24, %s803_s9  ;;  %s601_s2 = sshll.u32 %s371_s7, 4  ;;  %s602_s2 = int_to_ptr.vmem [resolvable:$true] %s601_s2 }
  0xc0   : > { %922 = vmatprep.subr.bf16.mxu0 %v1388_v4  ;;  %v959_v51 = vpack.c.bf16 %v507_v50, %v506_v49  ;;  %v800_v52 = vld [vmem:[%s381_s23] ss:$0 sm:$0xff]  ;;  %s804_s5 = sshll.u32 %s597_s6, 7  ;;  %s581_s23 = scalar_lea.sflag [#allocation4], %s2021_s15 }
  0xc1   : > { %945 = vmatpush3.bf16.msra.mxu1 %v944_v25  ;;  %s1831_s0 = scalar_lea.hbm %s2019_s26, %s804_s5  ;;  %s1198_s19 = scalar_lea.vmem %s602_s2, 128 }
  0xc2   : > { %946 = vmatprep.subr.bf16.mxu1 %v1388_v4  ;;  %p1199_p5 = scmp.ne.s32.totalorder %s602_s2, %s1198_s19  ;;  %s1204_s24 = scalar_lea.vmem %s1203_s17, 256 }
  0xc3   : > { %924 = vmatpush3.bf16.msra.mxu0 %v923_v22  ;;  %p1205_p2 = scmp.lt.s32.totalorder %s602_s2, %s1203_s17  ;;  %p1206_p6 = scmp.lt.s32.totalorder %s1204_s24, %s1198_s19 }
  0xc4   : > { %925 = vmatprep.subr.bf16.mxu0 %v1388_v4  ;;  %p1200_p12 = pnand %p1199_p5, %p2022_p3 }
  0xc5   : > { %948 = vmatpush3.bf16.msra.mxu1 %v947_v31  ;;  %p1207_p11 = por %p1206_p6, %p1205_p2 }
  0xc6   : > { %949 = vmatprep.subr.bf16.mxu1 %v1388_v4  ;;  %p1201_p10 = pneg %p1200_p12 }
  0xc7   : > { %927 = vmatpush3.bf16.msra.mxu0 %v926_v28 }
  0xc8   : > { %928 = vmatprep.subr.bf16.mxu0 %v1388_v4  ;;  %p1208_p13 = pnand %p1207_p11, %p1201_p10 }
  0xc9   : > { %951 = vmatpush3.bf16.msra.mxu1 %v950_v37 }
  0xca   : > { %952 = vmatprep.subr.bf16.mxu1 %v1388_v4 }
  0xcb   : > { %930 = vmatpush3.bf16.msra.mxu0 %v929_v34 }
  0xcc   : > { %931 = vmatprep.subr.bf16.mxu0 %v1388_v4 }
  0xcd   : > { %954 = vmatpush3.bf16.msra.mxu1 %v953_v43 }
  0xce   : > { %955 = vmatprep.subr.bf16.mxu1 %v1388_v4 }
  0xcf   : > { %933 = vmatpush3.bf16.msra.mxu0 %v932_v40 }
  0xd0   : > { %934 = vmatprep.subr.bf16.mxu0 %v1388_v4 }
  0xd1   : > { %957 = vmatpush3.bf16.msra.mxu1 %v956_v47 }
  0xd2   : > { %958 = vmatprep.subr.bf16.mxu1 %v1388_v4 }
  0xd3   : > { %936 = vmatpush3.bf16.msra.mxu0 %v935_v46 }
  0xd5   : > { %960 = vmatpush3.bf16.msra.mxu1 %v959_v51 }
  0xd6   : > { %876 = vmatmul.mubr.f32.vlgmr.msra.gmra.mrb[0].mxu0 %v395_v48 }
 0x1a9   : > { %v485_v53 = vpop.f32.mrb[0].mxu0 }
 0x1aa   : > { %v486_v54 = vadd.f32 %v800_v52, %v485_v53  ;;  %v877_v55 = vpop.f32.mrb[1].mxu0 }
 0x1ac   : > { %v489_v56 = vmax.f32 %v486_v54, 0.0 }
 0x1ae   : > { %490 = vst [vmem:[%s371_s7] sm:$0xff] %v489_v56  ;;  %911 = vmatmul.mubr.f32.vlgmr.msra.gmra.mrb[0].mxu1 %v489_v56 }
 0x1af   : > { %1211 = shalt.err (!%p1208_p13)
}
 0x1b0   : > { %s1212_s29 = scalar_lea.hbm %s1831_s0, 128  ;;  %s1216_s6 = scalar_lea.hbm %s2020_s14, 512 }
 0x1b1   : > { %p1213_p9 = scmp.ne.s32.totalorder %s1831_s0, %s1212_s29  ;;  %p1217_p4 = scmp.lt.u32.totalorder %s1831_s0, %s2020_s14 }
 0x1b2   : > { %p1218_p7 = scmp.lt.u32.totalorder %s1216_s6, %s1212_s29  ;;  %p1220_p5 = scmp.lt.u32.totalorder %s1212_s29, %s1831_s0 }
 0x1b3   : > { %p1214_p0 = pnand %p1213_p9, %p2022_p3 }
 0x1b4   : > { %p1219_p1 = por %p1218_p7, %p1217_p4 }
 0x1b5   : > { %p1215_p8 = pneg %p1214_p0 }
 0x1b6   : > { %p1221_p12 = por %p1220_p5, %p1219_p1 }
 0x1b8   : > { %p1222_p10 = pnand %p1221_p12, %p1215_p8 }
 0x1ba   : > { %1225 = shalt.err (!%p1222_p10)
}
 0x1bb   : > { %967 = dma.vmem_to_hbm [thread:$0]  (%p2022_p3), %s602_s2, 128, %s1831_s0, %s581_s23   ;;  %v491_v57 = vld [vmem:[%s1761_s20] sm:$0xff] }
 0x1bc   : > { %s805_s11 = sshll.u32 %s2016_s4, 7  ;;  %s614_s26 = sshll.u32 %s1761_s20, 4  ;;  %s1860_s26 = int_to_ptr.vmem [resolvable:$true] %s614_s26 }
 0x1bd   : > { %s2023_s13 = sld [smem:[#allocation32_spill]]  ;;  %s586_s25 = scalar_lea.sflag [#allocation10], %s1727_s1 }
 0x1be   : > { %s1226_s24 = scalar_lea.vmem %s1860_s26, 128  ;;  %p2024_p2 = scmp.ne.s32.totalorder %s1999_s16, 0 }
 0x1bf   : > { %p1227_p3 = scmp.ne.s32.totalorder %s1860_s26, %s1226_s24  ;;  %s1392_s0 = smov [#allocation9]  }
 0x1c0   : > { %s1230_s4 = sshll.u32 %s1392_s0, 4  ;;  %s1231_s4 = int_to_ptr.vmem [resolvable:$false] %s1230_s4 }
 0x1c1   : > { %p1228_p6 = pnand %p1227_p3, %p2024_p2  ;;  %s1232_s2 = scalar_lea.vmem %s1231_s4, 256 }
 0x1c2   : > { %p1233_p13 = scmp.lt.s32.totalorder %s1860_s26, %s1231_s4  ;;  %p1234_p9 = scmp.lt.s32.totalorder %s1232_s2, %s1226_s24 }
 0x1c3   : > { %s1858_s17 = scalar_lea.hbm %s2023_s13, %s805_s11  ;;  %p1229_p11 = pneg %p1228_p6 }
 0x1c4   : > { %p1235_p0 = por %p1234_p9, %p1233_p13 }
 0x1c6   : > { %p1236_p8 = pnand %p1235_p0, %p1229_p11 }
 0x281   : > { %v574_v58 = vpop.f32.mrb[0].mxu1 }
 0x282   : > { %v578_v59 = vadd.f32 %v574_v58, %v491_v57  ;;  %v912_v60 = vpop.f32.mrb[1].mxu1 }
 0x284   : > { %579 = vst [vmem:[%s1761_s20] sm:$0xff] %v578_v59 }
 0x285   : > { %1239 = shalt.err (!%p1236_p8)
}
 0x286   : > { %s1240_s1 = scalar_lea.hbm %s1858_s17, 128  ;;  %s1244_s29 = scalar_lea.hbm %s2023_s13, 256 }
 0x287   : > { %p1241_p4 = scmp.ne.s32.totalorder %s1858_s17, %s1240_s1  ;;  %p1245_p5 = scmp.lt.u32.totalorder %s1858_s17, %s2023_s13 }
 0x288   : > { %p1246_p12 = scmp.lt.u32.totalorder %s1244_s29, %s1240_s1  ;;  %p1248_p3 = scmp.lt.u32.totalorder %s1240_s1, %s1858_s17 }
 0x289   : > { %p1242_p7 = pnand %p1241_p4, %p2024_p2 }
 0x28a   : > { %p1247_p10 = por %p1246_p12, %p1245_p5 }
 0x28b   : > { %p1243_p1 = pneg %p1242_p7 }
 0x28c   : > { %p1249_p6 = por %p1248_p3, %p1247_p10 }
 0x28e   : > { %p1250_p11 = pnand %p1249_p6, %p1243_p1 }
 0x290   : > { %1253 = shalt.err (!%p1250_p11)
}
 0x291   : > { %968 = dma.vmem_to_hbm [thread:$0]  (%p2024_p2), %s1860_s26, 128, %s1858_s17, %s586_s25  }
 0x292 PF: > { %p989_p13 = scmp.ge.s32.totalorder %s1380_s10, 2  ;;  %s626_s6 = sand.u32 1, %s1328_s21  }
 0x293   : > { %p2025_p9 = scmp.ne.s32.totalorder %s1997_s18, 0  ;;  %s627_s5 = scalar_lea.sflag [#allocation4], %s626_s6 }
 0x295   : > { %p982_p0 = pnand %p989_p13, %p2025_p9 }
 0x297   : > { %1319 = dma.done.wait (!%p982_p0), %s627_s5, 128  }
 0x298   : > { %1321 = vsyncadd (!%p982_p0), %s627_s5, 4294967168  ;;  %s635_s12 = sand.u32 1, %s1352_s27   ;;  %p2026_p8 = scmp.ne.s32.totalorder %s2001_s30, 0 }
 0x299   : > { %s636_s16 = scalar_lea.sflag [#allocation10], %s635_s12 }
 0x29a   : > { %p985_p4 = pnand %p989_p13, %p2026_p8 }
 0x29c   : > { %1323 = dma.done.wait (!%p985_p4), %s636_s16, 128  }
 0x29d   : > { %1325 = vsyncadd (!%p985_p4), %s636_s16, 4294967168  ;;  %s29_s10 = sadd.s32 1, %s1380_s10   ;;  %s2028_s18 = sld [smem:[#allocation15_spill]] }
 0x29e   : > { %p1893_p2 = scmp.ge.s32.totalorder %s29_s10, 6   ;;  %s2029_s23 = sld [smem:[#allocation26_spill]] }
 0x29f   : > { %s2030_s24 = sld [smem:[#allocation16_spill]]  ;;  %s2031_s25 = sld [smem:[#allocation17_spill]] }
 0x2a0   : > { %s2032_s26 = sld [smem:[#allocation24_spill]]  ;;  %s2033_s15 = sld [smem:[#allocation18_spill]] }
 0x2a1   : > { %s2034_s29 = sld [smem:[#allocation25_spill]]  ;;  %s2035_s7 = sld [smem:[#allocation21_spill]] }
 0x2a2   : > { %s2036_s19 = sld [smem:[#allocation22_spill]]  ;;  %s2037_s9 = sld [smem:[#allocation23_spill]] }
 0x2a3   : > { %s2038_s21 = smov %s1332_s22  ;;  %s2039_s22 = smov %s2028_s18 }
 0x2a4   : > { %s2040_s27 = smov %s1356_s28  ;;  %s2042_s30 = smov %s1372_s8 }
 0x2a5   :  { %28 = sbr.rel (!%p1893_p2) target bundleno = 21 (0x15), region = 133 }
 0x2a6   : > { %s2041_s28 = smov %s2033_s15 }
 0x2a8   : > { %s2043_s8 = smov %s2036_s19 }
 0x2ac   :  { %641 = vsyncpa [#allocation3], 1 }
 0x2ad   :  { %643 = vsyncpa [#allocation3 + $0x1], 1 }
 0x2ae   :  { %644 = vsyncpa [#allocation6], 1 }
 0x2af   :  { %646 = vsyncpa [#allocation6 + $0x1], 1 }
 0x2b0   :  { %647 = vsyncpa [#allocation4], 1 }
 0x2b1   :  { %649 = vsyncpa [#allocation4 + $0x1], 1 }
 0x2b2   :  { %650 = vsyncpa [#allocation10], 1 }
 0x2b3   :  { %652 = vsyncpa [#allocation10 + $0x1], 1 }

</bundles_post_ra>
